<compile_context>
chip_gen: v5e
topology: v5e:2x2
jax: 0.10.0
libtpu: 0.0.40
codegen_flags: <defaults>
</compile_context>

<pallas_src>
import functools
import math

import jax
import jax.numpy as jnp
from jax.experimental import pallas as pl
from jax.experimental.pallas import tpu as pltpu


def _attention_kernel(x_ref, wq_ref, bq_ref, wk_ref, bk_ref, wv_ref, bv_ref,
                      o_ref, *, bb, s, h):
    # x arrives f32 (no wrapper-side cast / extra HBM pass); the bf16 cast is
    # a VPU op hidden under the MXU / softmax work.
    x = x_ref[...].astype(jnp.bfloat16)                        # (bb*s, H)

    # torch Linear: y = x @ W.T + b.  Weights arrive pre-transposed to
    # (in, out), pre-cast to bf16; 1/sqrt(H) is already folded into wq/bq.
    # f32 accumulation on the MXU; bias add in f32.
    q = jnp.dot(x, wq_ref[...], preferred_element_type=jnp.float32) + bq_ref[...]
    k = jnp.dot(x, wk_ref[...], preferred_element_type=jnp.float32) + bk_ref[...]
    v = jnp.dot(x, wv_ref[...], preferred_element_type=jnp.float32) + bv_ref[...]

    # One batched attention over all bb batch elements (no Python unroll).
    # The reshape only splits the row (sublane) axis -- s = 8 keeps f32
    # sublane tiles aligned; the minor (lane) dim is untouched.
    qb = q.reshape(bb, s, h)
    kb = k.reshape(bb, s, h)
    vb = v.reshape(bb, s, h)

    # scores[b] = q[b] @ k[b].T  (contract last dims, batch over dim 0 -> no
    # explicit transpose / XLU work).
    scores = jax.lax.dot_general(
        qb, kb, (((2,), (2,)), ((0,), (0,))),
        preferred_element_type=jnp.float32)                    # (bb, s, s)

    # Numerically stable softmax in f32; denominator reciprocal on the EUP.
    m = jnp.max(scores, axis=-1, keepdims=True)
    e = jnp.exp(scores - m)
    denom = jnp.sum(e, axis=-1, keepdims=True)
    attn = e * pl.reciprocal(denom, approx=True)

    # out[b] = attn[b] @ v[b]   (tiny tiles -> keep f32 operands for accuracy)
    out = jax.lax.dot_general(
        attn, vb, (((2,), (1,)), ((0,), (0,))),
        preferred_element_type=jnp.float32)                    # (bb, s, H)

    # Single store of the whole tile.
    o_ref[...] = out.reshape(bb * s, h).astype(o_ref.dtype)


def _choose_batch_block(batch, seq, hidden):
    """Pick the per-step batch block.

    Targets ~512 rows per grid step (fills the MXU M dim and amortizes the
    ~0.35 us per-step pipeline overhead; measured ~85% of HBM roofline at 512
    vs ~63% at 256), while (a) keeping at least 2 grid steps whenever B >= 2
    so dimension_semantics=("parallel",) can shard work across v7x's two
    TensorCores, and (b) capping the per-step f32 working set at 16 MiB so
    the tile is safe even under v7x's 64 MiB physical VMEM.
    """
    target_rows = 512
    budget_bytes = 16 * 1024 * 1024
    max_bb = (batch // 2) if batch >= 2 else batch
    max_bb = max(1, max_bb)

    best = 1
    for cand in range(1, max_bb + 1):
        if batch % cand:
            continue
        rows = cand * seq
        # Rough per-step f32 working set: double-buffered x + out tiles,
        # bf16 x copy, q/k/v f32, scores + attn.
        work = rows * (32 * hidden + 8 * seq)
        if work > budget_bytes:
            break
        best = cand
        if rows >= target_rows:
            break
    return best


def attention_pallas(x, wq, bq, wk, bk, wv, bv):
    """x: (B, S, H) f32; wq/wk/wv: (H, H) torch-Linear layout (out, in);
    biases (H,).  Returns (B, S, H) f32."""
    B, S, H = x.shape
    bb = _choose_batch_block(B, S, H)
    rows = bb * S
    inv_scale = 1.0 / math.sqrt(float(H))

    # Wrapper-side constant folds (weight-side only; x stays f32 so there is
    # no extra HBM pass for a standalone activation cast):
    wq_t = (wq.T * inv_scale).astype(jnp.bfloat16)   # (in, out), scale folded
    wk_t = wk.T.astype(jnp.bfloat16)
    wv_t = wv.T.astype(jnp.bfloat16)
    bq2 = (bq * inv_scale).reshape(1, H).astype(jnp.float32)
    bk2 = bk.reshape(1, H).astype(jnp.float32)
    bv2 = bv.reshape(1, H).astype(jnp.float32)

    x2 = x.reshape(B * S, H)                         # contiguous metadata reshape

    kernel = functools.partial(_attention_kernel, bb=bb, s=S, h=H)

    cost = pl.CostEstimate(
        flops=B * (6 * S * H * H + 4 * S * S * H),
        transcendentals=B * S * S,
        bytes_accessed=(B * S * H * 4            # x (f32 in)
                        + 3 * H * H * 2          # weights (bf16)
                        + 3 * H * 4              # biases
                        + B * S * H * 4),        # output (f32)
    )

    full2d = lambda b: (0, 0)
    out_flat = pl.pallas_call(
        kernel,
        out_shape=jax.ShapeDtypeStruct((B * S, H), jnp.float32),
        grid_spec=pltpu.PrefetchScalarGridSpec(
            num_scalar_prefetch=0,
            grid=(B // bb,),
            in_specs=[
                pl.BlockSpec((rows, H), lambda b: (b, 0)),  # x rows (f32)
                pl.BlockSpec((H, H), full2d),               # Wq^T (resident, scaled)
                pl.BlockSpec((1, H), full2d),               # bq (scaled)
                pl.BlockSpec((H, H), full2d),               # Wk^T
                pl.BlockSpec((1, H), full2d),               # bk
                pl.BlockSpec((H, H), full2d),               # Wv^T
                pl.BlockSpec((1, H), full2d),               # bv
            ],
            out_specs=pl.BlockSpec((rows, H), lambda b: (b, 0)),
        ),
        compiler_params=pltpu.CompilerParams(
            dimension_semantics=("parallel",),
            vmem_limit_bytes=32 * 1024 * 1024,   # above the v5e 16 MiB default
        ),
        cost_estimate=cost,
    )(x2, wq_t, bq2, wk_t, bk2, wv_t, bv2)

    return out_flat.reshape(B, S, H)


def attention_reference(x, wq, bq, wk, bk, wv, bv):
    """Plain-JAX (f32) reference mirroring the PyTorch forward."""
    H = x.shape[-1]
    q = x @ wq.T + bq
    k = x @ wk.T + bk
    v = x @ wv.T + bv
    scores = jnp.einsum("bqh,bkh->bqk", q, k) / jnp.sqrt(jnp.float32(H))
    attn = jax.nn.softmax(scores, axis=-1)
    return jnp.einsum("bqk,bkh->bqh", attn, v)


if __name__ == "__main__":
    B, S, H = 2, 8, 32

    key = jax.random.PRNGKey(0)
    kx, kwq, kbq, kwk, kbk, kwv, kbv = jax.random.split(key, 7)

    bound = 1.0 / math.sqrt(float(H))
    x = jax.random.normal(kx, (B, S, H), dtype=jnp.float32)
    wq = jax.random.uniform(kwq, (H, H), jnp.float32, -bound, bound)
    bq = jax.random.uniform(kbq, (H,), jnp.float32, -bound, bound)
    wk = jax.random.uniform(kwk, (H, H), jnp.float32, -bound, bound)
    bk = jax.random.uniform(kbk, (H,), jnp.float32, -bound, bound)
    wv = jax.random.uniform(kwv, (H, H), jnp.float32, -bound, bound)
    bv = jax.random.uniform(kbv, (H,), jnp.float32, -bound, bound)

    out = attention_pallas(x, wq, bq, wk, bk, wv, bv)
    out = jax.block_until_ready(out)

    ref = attention_reference(x, wq, bq, wk, bk, wv, bv)
    assert out.shape == (B, S, H)
    # bf16 projection operands + approx-reciprocal softmax => looser tolerance
    # than a pure-f32 kernel would need (scores / softmax / PV are f32).
    assert jnp.allclose(out, ref, atol=2e-2, rtol=2e-2), "mismatch vs reference"

    print("KERNEL_OK")
</pallas_src>

<mosaic_0001>
module attributes {stable_mosaic.version = 11 : i64} {
  func.func @_attention_kernel(%arg0: i32, %arg1: memref<8x32xf32, #tpu.memory_space<vmem>>, %arg2: memref<32x32xbf16, #tpu.memory_space<vmem>>, %arg3: memref<1x32xf32, #tpu.memory_space<vmem>>, %arg4: memref<32x32xbf16, #tpu.memory_space<vmem>>, %arg5: memref<1x32xf32, #tpu.memory_space<vmem>>, %arg6: memref<32x32xbf16, #tpu.memory_space<vmem>>, %arg7: memref<1x32xf32, #tpu.memory_space<vmem>>, %arg8: memref<8x32xf32, #tpu.memory_space<vmem>>) attributes {dimension_semantics = [#tpu.dimension_semantics<parallel>], iteration_bounds = array<i64: 2>, scalar_prefetch = 0 : i64, scratch_operands = 0 : i64, tpu.core_type = #tpu.core_type<tc>, window_params = [{transform_indices = @transform_0, window_bounds = array<i64: 8, 32>}, {pipeline_mode = #tpu.pipeline_mode<synchronous>, transform_indices = @transform_1, window_bounds = array<i64: 32, 32>}, {pipeline_mode = #tpu.pipeline_mode<synchronous>, transform_indices = @transform_2, window_bounds = array<i64: 1, 32>}, {pipeline_mode = #tpu.pipeline_mode<synchronous>, transform_indices = @transform_3, window_bounds = array<i64: 32, 32>}, {pipeline_mode = #tpu.pipeline_mode<synchronous>, transform_indices = @transform_4, window_bounds = array<i64: 1, 32>}, {pipeline_mode = #tpu.pipeline_mode<synchronous>, transform_indices = @transform_5, window_bounds = array<i64: 32, 32>}, {pipeline_mode = #tpu.pipeline_mode<synchronous>, transform_indices = @transform_6, window_bounds = array<i64: 1, 32>}, {transform_indices = @transform_7, window_bounds = array<i64: 8, 32>}]} {
    %c0 = arith.constant 0 : index
    %c0_0 = arith.constant 0 : index
    %0 = vector.load %arg1[%c0, %c0_0] : memref<8x32xf32, #tpu.memory_space<vmem>>, vector<8x32xf32>
    %1 = arith.truncf %0 : vector<8x32xf32> to vector<8x32xbf16>
    %c0_1 = arith.constant 0 : index
    %c0_2 = arith.constant 0 : index
    %2 = vector.load %arg2[%c0_1, %c0_2] : memref<32x32xbf16, #tpu.memory_space<vmem>>, vector<32x32xbf16>
    %cst = arith.constant dense<0.000000e+00> : vector<8x32xf32>
    %3 = tpu.matmul %1, %2, %cst {dimension_numbers = #tpu.dot_dimension_numbers<[1], [0], [0], [1], [0, 0, 1, 1], [], []>} : vector<8x32xbf16>, vector<32x32xbf16>, vector<8x32xf32> -> vector<8x32xf32>
    %c0_3 = arith.constant 0 : index
    %c0_4 = arith.constant 0 : index
    %4 = vector.load %arg3[%c0_3, %c0_4] : memref<1x32xf32, #tpu.memory_space<vmem>>, vector<1x32xf32>
    %5 = vector.broadcast %4 : vector<1x32xf32> to vector<8x32xf32>
    %6 = arith.addf %3, %5 : vector<8x32xf32>
    %c0_5 = arith.constant 0 : index
    %c0_6 = arith.constant 0 : index
    %7 = vector.load %arg4[%c0_5, %c0_6] : memref<32x32xbf16, #tpu.memory_space<vmem>>, vector<32x32xbf16>
    %cst_7 = arith.constant dense<0.000000e+00> : vector<8x32xf32>
    %8 = tpu.matmul %1, %7, %cst_7 {dimension_numbers = #tpu.dot_dimension_numbers<[1], [0], [0], [1], [0, 0, 1, 1], [], []>} : vector<8x32xbf16>, vector<32x32xbf16>, vector<8x32xf32> -> vector<8x32xf32>
    %c0_8 = arith.constant 0 : index
    %c0_9 = arith.constant 0 : index
    %9 = vector.load %arg5[%c0_8, %c0_9] : memref<1x32xf32, #tpu.memory_space<vmem>>, vector<1x32xf32>
    %10 = vector.broadcast %9 : vector<1x32xf32> to vector<8x32xf32>
    %11 = arith.addf %8, %10 : vector<8x32xf32>
    %c0_10 = arith.constant 0 : index
    %c0_11 = arith.constant 0 : index
    %12 = vector.load %arg6[%c0_10, %c0_11] : memref<32x32xbf16, #tpu.memory_space<vmem>>, vector<32x32xbf16>
    %cst_12 = arith.constant dense<0.000000e+00> : vector<8x32xf32>
    %13 = tpu.matmul %1, %12, %cst_12 {dimension_numbers = #tpu.dot_dimension_numbers<[1], [0], [0], [1], [0, 0, 1, 1], [], []>} : vector<8x32xbf16>, vector<32x32xbf16>, vector<8x32xf32> -> vector<8x32xf32>
    %c0_13 = arith.constant 0 : index
    %c0_14 = arith.constant 0 : index
    %14 = vector.load %arg7[%c0_13, %c0_14] : memref<1x32xf32, #tpu.memory_space<vmem>>, vector<1x32xf32>
    %15 = vector.broadcast %14 : vector<1x32xf32> to vector<8x32xf32>
    %16 = arith.addf %13, %15 : vector<8x32xf32>
    %17 = vector.shape_cast %6 : vector<8x32xf32> to vector<1x8x32xf32>
    %18 = vector.shape_cast %11 : vector<8x32xf32> to vector<1x8x32xf32>
    %19 = vector.shape_cast %16 : vector<8x32xf32> to vector<1x8x32xf32>
    %cst_15 = arith.constant dense<0.000000e+00> : vector<1x8x8xf32>
    %20 = tpu.matmul %17, %18, %cst_15 {dimension_numbers = #tpu.dot_dimension_numbers<[2], [2], [1], [1], [0, 0, 0, 1, 1, 1], [0], [0]>} : vector<1x8x32xf32>, vector<1x8x32xf32>, vector<1x8x8xf32> -> vector<1x8x8xf32>
    %cst_16 = arith.constant dense<0xFF800000> : vector<1x8xf32>
    %21 = vector.multi_reduction <maximumf>, %20, %cst_16 [2] : vector<1x8x8xf32> to vector<1x8xf32>
    %22 = vector.shape_cast %21 : vector<1x8xf32> to vector<1x8x1xf32>
    %23 = vector.broadcast %22 : vector<1x8x1xf32> to vector<1x8x8xf32>
    %24 = arith.subf %20, %23 : vector<1x8x8xf32>
    %25 = math.exp %24 : vector<1x8x8xf32>
    %cst_17 = arith.constant dense<0.000000e+00> : vector<1x8xf32>
    %26 = vector.multi_reduction <add>, %25, %cst_17 [2] : vector<1x8x8xf32> to vector<1x8xf32>
    %27 = vector.shape_cast %26 : vector<1x8xf32> to vector<1x8x1xf32>
    %28 = tpu.reciprocal %27 {approx = true} : vector<1x8x1xf32> -> vector<1x8x1xf32>
    %29 = vector.broadcast %28 : vector<1x8x1xf32> to vector<1x8x8xf32>
    %30 = arith.mulf %25, %29 : vector<1x8x8xf32>
    %cst_18 = arith.constant dense<0.000000e+00> : vector<1x8x32xf32>
    %31 = tpu.matmul %30, %19, %cst_18 {dimension_numbers = #tpu.dot_dimension_numbers<[2], [1], [1], [2], [0, 0, 0, 1, 1, 2], [0], [0]>} : vector<1x8x8xf32>, vector<1x8x32xf32>, vector<1x8x32xf32> -> vector<1x8x32xf32>
    %32 = vector.shape_cast %31 : vector<1x8x32xf32> to vector<8x32xf32>
    %c0_19 = arith.constant 0 : index
    %c0_20 = arith.constant 0 : index
    %33 = vector.load %arg8[%c0_19, %c0_20] : memref<8x32xf32, #tpu.memory_space<vmem>>, vector<8x32xf32>
    tpu.vector_store %arg8[%c0_19, %c0_20], %32 {strides = array<i32>} : memref<8x32xf32, #tpu.memory_space<vmem>>, vector<8x32xf32>,
    return
  }
  func.func @transform_0(%arg0: i32) -> (i32, i32) {
    %c0_i32 = arith.constant 0 : i32
    %c0_i32_0 = arith.constant 0 : i32
    return %arg0, %c0_i32 : i32, i32
  }
  func.func @transform_1(%arg0: i32) -> (i32, i32) {
    %c0_i32 = arith.constant 0 : i32
    %c0_i32_0 = arith.constant 0 : i32
    %c0_i32_1 = arith.constant 0 : i32
    return %c0_i32, %c0_i32_0 : i32, i32
  }
  func.func @transform_2(%arg0: i32) -> (i32, i32) {
    %c0_i32 = arith.constant 0 : i32
    %c0_i32_0 = arith.constant 0 : i32
    %c0_i32_1 = arith.constant 0 : i32
    return %c0_i32, %c0_i32_0 : i32, i32
  }
  func.func @transform_3(%arg0: i32) -> (i32, i32) {
    %c0_i32 = arith.constant 0 : i32
    %c0_i32_0 = arith.constant 0 : i32
    %c0_i32_1 = arith.constant 0 : i32
    return %c0_i32, %c0_i32_0 : i32, i32
  }
  func.func @transform_4(%arg0: i32) -> (i32, i32) {
    %c0_i32 = arith.constant 0 : i32
    %c0_i32_0 = arith.constant 0 : i32
    %c0_i32_1 = arith.constant 0 : i32
    return %c0_i32, %c0_i32_0 : i32, i32
  }
  func.func @transform_5(%arg0: i32) -> (i32, i32) {
    %c0_i32 = arith.constant 0 : i32
    %c0_i32_0 = arith.constant 0 : i32
    %c0_i32_1 = arith.constant 0 : i32
    return %c0_i32, %c0_i32_0 : i32, i32
  }
  func.func @transform_6(%arg0: i32) -> (i32, i32) {
    %c0_i32 = arith.constant 0 : i32
    %c0_i32_0 = arith.constant 0 : i32
    %c0_i32_1 = arith.constant 0 : i32
    return %c0_i32, %c0_i32_0 : i32, i32
  }
  func.func @transform_7(%arg0: i32) -> (i32, i32) {
    %c0_i32 = arith.constant 0 : i32
    %c0_i32_0 = arith.constant 0 : i32
    return %arg0, %c0_i32 : i32, i32
  }
}

</mosaic_0001>

<bundles_post_ra>
// kernel: tpu_custom_call.1
= control target key start
LH: loop header
LB: loop body
LE: loop exit
PB: predicated region body
PF: predicated region fallthrough
CT: control target
= control target key end

     0   :  { %s1188_s0 = inlined_call_operand.hbm [shape: f32[16,32], index: 0, kind: input, shape index: {}]   ;;  %s1189_s1 = inlined_call_operand.hbm [shape: bf16[32,32], index: 1, kind: input, shape index: {}]   ;;  %s1190_s2 = inlined_call_operand.vmem [shape: f32[1,32], index: 2, kind: input, shape index: {}]   ;;  %s1191_s3 = inlined_call_operand.hbm [shape: bf16[32,32], index: 3, kind: input, shape index: {}]   ;;  %s1192_s4 = inlined_call_operand.vmem [shape: f32[1,32], index: 4, kind: input, shape index: {}]   ;;  %s1193_s5 = inlined_call_operand.hbm [shape: bf16[32,32], index: 5, kind: input, shape index: {}]   ;;  %s1194_s6 = inlined_call_operand.vmem [shape: f32[1,32], index: 6, kind: input, shape index: {}]   ;;  %s1195_s7 = inlined_call_operand.hbm [shape: f32[16,32], index: 7, kind: output, shape index: {}]  }
   0x1   :  { %1196 = sst [smem:[#allocation15_spill]] %s1189_s1 }
   0x2   :  { %12 = vsyncpa [#allocation3], 0 }
   0x3   :  { %14 = vsyncpa [#allocation3 + $0x1], 0 }
   0x4   :  { %15 = vsyncpa [#allocation6], 0 }
   0x5   :  { %16 = vsyncpa [#allocation9], 0 }
   0x6   :  { %17 = vsyncpa [#allocation4], 0 }
   0x7   :  { %19 = vsyncpa [#allocation4 + $0x1], 0  ;;  %s1010_s24 = smov 0   ;;  %s1012_s25 = smov 0  }
   0x8   :  { %s1014_s26 = smov 0   ;;  %s1016_s27 = smov 0  }
   0x9 LB: > { %s1197_s1 = sld [smem:[#allocation15_spill]]  ;;  %s1034_s8 = sadd.s32 4294967295, %s963_s27   ;;  %s963_s27 = sphi %s1016_s27, %s1208_s27   ;;  %s959_s26 = sphi %s1014_s26, %s1207_s26   ;;  %s955_s25 = sphi %s1012_s25, %s1206_s25   ;;  %s951_s24 = sphi %s1010_s24, %s1205_s24  }
   0xa   : > { %p630_p0 = scmp.ge.s32.totalorder %s963_s27, 1  ;;  %p46_p1 = scmp.eq.s32.totalorder %s1034_s8, 0 }
   0xb   : > { %p208_p2 = scmp.lt.s32.totalorder %s963_s27, 3  ;;  %s965_s10 = smov [#allocation5]  }
   0xc   : > { %s221_s11 = sshll.u32 %s965_s10, 4  ;;  %s236_s14 = sshll.u32 %s1191_s3, 4  ;;  %s222_s11 = int_to_ptr.vmem [resolvable:$true] %s221_s11  ;;  %s237_s14 = int_to_ptr.hbm [resolvable:$true] %s236_s14 }
   0xd   : > { %p1039_p3 = pnand %p630_p0, %p208_p2  ;;  %s253_s18 = sshll.u32 %s1193_s5, 4  ;;  %s254_s18 = int_to_ptr.hbm [resolvable:$true] %s253_s18 }
   0xe   : > { %s966_s19 = smov [#allocation7]   ;;  %s967_s21 = smov 64  }
   0xf   : > { %s219_s30 = sshll.u32 %s1197_s1, 4  ;;  %p699_p4 = pneg %p1039_p3  ;;  %s220_s30 = int_to_ptr.hbm [resolvable:$true] %s219_s30 }
  0x10   : > { %s238_s20 = sshll.u32 %s966_s19, 4  ;;  %s968_s22 = smov 4   ;;  %s239_s20 = int_to_ptr.vmem [resolvable:$true] %s238_s20 }
  0x11   : > { %p1051_p6 = pnand %p699_p4, %p46_p1  ;;  %s969_s23 = smov [#allocation8]  }
  0x12   : > { %s255_s28 = sshll.u32 %s969_s23, 4  ;;  %s629_s29 = sadd.s32 4294967294, %s963_s27   ;;  %s256_s28 = int_to_ptr.vmem [resolvable:$true] %s255_s28 }
  0x13   : > { %702 = dma.hbm_to_vmem [thread:$0]  (!%p1051_p6), %s220_s30, 256, %s222_s11, [#allocation6], %s967_s21, %s967_s21, %s968_s22  }
  0x14   : > { %705 = dma.hbm_to_vmem [thread:$0]  (!%p1051_p6), %s237_s14, 256, %s239_s20, [#allocation6], %s967_s21, %s967_s21, %s968_s22  }
  0x15   : > { %708 = dma.hbm_to_vmem [thread:$0]  (!%p1051_p6), %s254_s18, 256, %s256_s28, [#allocation9], %s967_s21, %s967_s21, %s968_s22  }
  0x16   : > { %s1066_s10 = sadd.s32 1, %s963_s27   ;;  %s32_s12 = sadd.s32 1, %s959_s26 }
  0x17   : > { %s29_s30 = ssub.s32 %s963_s27, %s1066_s10  ;;  %p39_p7 = scmp.ne.s32.totalorder %s959_s26, %s955_s25 }
  0x18   : > { %p30_p8 = scmp.eq.s32.totalorder %s29_s30, 0  ;;  %p40_p9 = scmp.eq.s32.totalorder %s963_s27, 0 }
  0x19   : > { %p45_p10 = scmp.ne.s32.totalorder %s955_s25, %s951_s24  ;;  %p195_p11 = scmp.eq.s32.totalorder %s1034_s8, 1 }
  0x1a   : > { %s1078_s11 = scalar_select %p30_p8, %s959_s26, %s32_s12  }
  0x1b   : > { %p1082_p12 = por %p46_p1, %p45_p10  ;;  %p1086_p13 = por %p195_p11, %p39_p7 }
  0x1c   : > { %p201_p0 = scmp.eq.s32.totalorder %s629_s29, 1  ;;  %p41_p2 = por %p40_p9, %p39_p7 }
  0x1d   : > { %s272_s15 = sand.u32 1, %s959_s26   ;;  %p720_p6 = scmp.lt.s32.totalorder %s963_s27, 2 }
  0x1e   : > { %p1091_p4 = por %p201_p0, %p45_p10  ;;  %s635_s17 = sshll.u32 %s272_s15, 3 }
  0x1f   : > { %s636_s18 = sshll.u32 %s963_s27, 3  ;;  %s276_s23 = scalar_lea.vmem [#allocation2], %s635_s17 }
  0x20   : > { %s280_s21 = scalar_lea.hbm %s1188_s0, %s636_s18  ;;  %s284_s28 = sshll.u32 %s276_s23, 4  ;;  %s285_s28 = int_to_ptr.vmem [resolvable:$true] %s284_s28 }
  0x21   : > { %s282_s22 = sshll.u32 %s280_s21, 4  ;;  %p1100_p8 = pnand %p720_p6, %p41_p2  ;;  %s283_s22 = int_to_ptr.hbm [resolvable:$true] %s282_s22 }
  0x22   : > { %s273_s12 = scalar_lea.sflag [#allocation3], %s272_s15  ;;  %s859_s30 = sshra.s32 %s283_s22, 4  ;;  %s860_s30 = int_to_ptr.hbm [resolvable:$true] %s859_s30 }
  0x23   : > { %s861_s1 = scalar_lea.hbm %s860_s30, 8  ;;  %p863_p9 = pneg %p1100_p8 }
  0x24   : > { %p862_p7 = scmp.ne.s32.totalorder %s860_s30, %s861_s1  ;;  %s866_s17 = scalar_lea.hbm %s1188_s0, 16 }
  0x25   : > { %p867_p0 = scmp.lt.s32.totalorder %s860_s30, %s1188_s0  ;;  %p868_p2 = scmp.lt.s32.totalorder %s866_s17, %s861_s1 }
  0x26   : > { %p864_p10 = pnand %p863_p9, %p862_p7 }
  0x27   : > { %p869_p6 = por %p868_p2, %p867_p0 }
  0x28   : > { %p865_p11 = pneg %p864_p10 }
  0x2a   : > { %p870_p5 = pnand %p869_p6, %p865_p11 }
  0x2c   : > { %873 = shalt.err (!%p870_p5)
}
  0x2d   : > { %712 = dma.hbm_to_vmem [thread:$0]  (!%p1100_p8), %s283_s22, 128, %s285_s28, %s273_s12  }
  0x2e   : > { %293 = sbr.rel (%p1039_p3) target bundleno = 716 (0x2cc), region = 48  ;;  %s1117_s15 = sand.u32 (!%p1039_p3), 1, %s955_s25  }
  0x2f   : > { %s638_s23 = sshll.u32 (!%p1039_p3), %s1117_s15, 3  ;;  %s296_s18 = scalar_lea.sflag (!%p1039_p3), [#allocation3], %s1117_s15 }
  0x30   : > { %s299_s1 = scalar_lea.vmem (!%p1039_p3), [#allocation2], %s638_s23 }
  0x33   : > { %934 = dma.done.wait (%p1082_p12), %s296_s18, 128  }
  0x34   : > { %936 = vsyncadd (%p1082_p12), %s296_s18, 4294967168 }
  0x35   : > { %938 = dma.done.wait (%p46_p1), [#allocation6], 512  }
  0x36   : > { %940 = vsyncadd (%p46_p1), [#allocation6], 4294966784 }
  0x37   : > { %942 = dma.done.wait (%p46_p1), [#allocation9], 256  }
  0x38   : > { %944 = vsyncadd (%p46_p1), [#allocation9], 4294967040  ;;  %v678_v0 = vld [vmem:[#allocation5 + $0x8] sm:$0xff]  ;;  %v680_v1 = vld [vmem:[#allocation7 + $0x8] sm:$0xff]  ;;  %vm369_vm0 = vcmask 261120   ;;  %vm478_vm1 = vcmask 64512  }
  0x39   : > { %v677_v2 = vld [vmem:[#allocation5] sm:$0xff]  ;;  %v679_v3 = vld [vmem:[#allocation7] sm:$0xff]  ;;  %379 = vmatpush.bf16.msra.mxu0 %v678_v0  ;;  %412 = vmatpush.bf16.msra.mxu1 %v680_v1  ;;  %v682_v14 = vld [vmem:[#allocation8 + $0x8] sm:$0xff]  ;;  %s674_s30 = sshll.u32 %s1034_s8, 3  ;;  %s345_s21 = scalar_lea.vmem [#allocation10], %s638_s23 }
  0x3a   : > { %v347_v4 = vld [vmem:[%s299_s1] sm:$0xff]  ;;  %445 = vmatpush.bf16.msra.mxu2 %v682_v14  ;;  %v681_v15 = vld [vmem:[#allocation8] sm:$0xff]  ;;  %s525_s20 = scalar_lea.hbm %s1195_s7, %s674_s30  ;;  %s527_s18 = sshll.u32 %s345_s21, 4  ;;  %s528_s18 = int_to_ptr.vmem [resolvable:$true] %s527_s18 }
  0x3b   : > { %v348_v5 = vpack.c.bf16 %v347_v4, %v347_v4  ;;  %v763_v6 = vld [vmem:[%s1192_s4] ss:$0 sm:$0xff]  ;;  %s529_s1 = sshll.u32 %s525_s20, 4  ;;  %s515_s9 = scalar_lea.sflag [#allocation4], %s1117_s15  ;;  %s530_s1 = int_to_ptr.hbm [resolvable:$true] %s529_s1 }
  0x3c   : > { %v762_v7 = vld [vmem:[%s1190_s2] ss:$0 sm:$0xff]  ;;  %s903_s13 = sshra.s32 %s530_s1, 4  ;;  %s909_s29 = scalar_lea.hbm %s1195_s7, 16  ;;  %s904_s13 = int_to_ptr.hbm [resolvable:$true] %s903_s13 }
  0x3d   : > { %380 = vmatpush.bf16.msra.mxu0 %v677_v2  ;;  %413 = vmatpush.bf16.msra.mxu1 %v679_v3  ;;  %v764_v18 = vld [vmem:[%s1194_s6] ss:$0 sm:$0xff]  ;;  %s905_s22 = scalar_lea.hbm %s904_s13, 8  ;;  %p910_p12 = scmp.lt.s32.totalorder %s904_s13, %s1195_s7 }
  0x3e   : > { %446 = vmatpush.bf16.msra.mxu2 %v681_v15  ;;  %p906_p1 = scmp.ne.s32.totalorder %s904_s13, %s905_s22  ;;  %p911_p8 = scmp.lt.s32.totalorder %s909_s29, %s905_s22 }
  0x40   : > { %651 = vmatmul.msk.bf16.vlgmr.msra.gmra.mxu0 %vm369_vm0, %v348_v5  ;;  %660 = vmatmul.msk.bf16.vlgmr.msra.gmra.mxu1 %vm369_vm0, %v348_v5  ;;  %p907_p3 = pnand %p906_p1, %p1086_p13  ;;  %p912_p7 = por %p911_p8, %p910_p12 }
  0x41   : > { %669 = vmatmul.msk.bf16.vlgmr.msra.gmra.mxu2 %vm369_vm0, %v348_v5 }
  0x42   : > { %p908_p5 = pneg %p907_p3 }
  0x44   : > { %p913_p9 = pnand %p912_p7, %p908_p5 }
  0xbd   : > { %v382_v8 = vpop.f32.mrf.mxu0  ;;  %v415_v9 = vpop.f32.mrf.mxu1 }
  0xbe   : > { %v416_v10 = vadd.f32 %v763_v6, %v415_v9  ;;  %v383_v11 = vadd.f32 %v762_v7, %v382_v8 }
  0xc0   : > { %670 = vmatpush.xpose.msk.msra.mxu3 %vm369_vm0, %v416_v10 }
  0xc3   : > { %671 = vmatmul.msk.f32.vlgmr.msra.gmra.mxu3 %vm369_vm0, %v383_v11 }
  0xc4   : > { %v448_v19 = vpop.f32.mrf.mxu2 }
  0xc5   : > { %v384_v12 = vpop.f32.mrf.mxu0  ;;  %v417_v13 = vpop.f32.mrf.mxu1  ;;  %v449_v20 = vadd.f32 %v764_v18, %v448_v19 }
  0xc7   : > { %508 = vmatpush.msrb.mxu3 %v449_v20 }
  0xcc   : > { %v450_v23 = vpop.f32.mrf.mxu2 }
 0x146   : > { %v475_v16 = vpop.f32.mrf.mxu3 }
 0x147   : > { %v479_v17 = vsel %vm478_vm1, %v475_v16, -inf }
 0x148   : > { %480 = vmax.xlane.f32.xlu0 %v479_v17 }
 0x1bb   : > { %v481_v21 = vpop.xlane.xlu0 %480 }
 0x1bc   : > { %v482_v22 = vsub.f32 %v475_v16, %v481_v21 }
 0x1be   : > { %v483_v24 = vmul.f32 1.442695, %v482_v22 }
 0x1c0   : > { %765 = vpow2.f32 %v483_v24 }
 0x1c6   : > { %v766_v25 = vpop.eup %765 }
 0x1c7   : > { %v485_v26 = vsel %vm478_vm1, %v766_v25, 0.0 }
 0x1c8   : > { %486 = vadd.xlane.f32.xlu0 %v485_v26 }
 0x23b   : > { %v487_v27 = vpop.xlane.xlu0 %486 }
 0x23c   : > { %767 = vrcp.f32 %v487_v27 }
 0x242   : > { %v768_v28 = vpop.eup %767 }
 0x243   : > { %v489_v29 = vmul.f32 %v768_v28, %v766_v25 }
 0x245   : > { %672 = vmatmul.msk.f32.vlgmr.msrb.gmra.mxu3 %vm478_vm1, %v489_v29 }
 0x2c8   : > { %v510_v30 = vpop.f32.mrf.mxu3 }
 0x2c9   : > { %513 = vst.msk [vmem:[%s345_s21] sm:$0xff] %vm369_vm0, %v510_v30 }
 0x2ca   : > { %916 = shalt.err (!%p913_p9)
}
 0x2cb   : > { %697 = dma.vmem_to_hbm [thread:$0]  (%p1086_p13), %s528_s18, 128, %s530_s1, %s515_s9  }
 0x2cc PF: > { %s541_s15 = sand.u32 1, %s951_s24   ;;  %p1204_p10 = scmp.ge.s32.totalorder %s963_s27, 2 }
 0x2cd   : > { %s542_s30 = scalar_lea.sflag [#allocation4], %s541_s15 }
 0x2ce   : > { %p714_p11 = pnand %p1204_p10, %p1091_p4 }
 0x2d0   : > { %p715_p0 = pneg %p714_p11 }
 0x2d2   : > { %946 = dma.done.wait (%p715_p0), %s542_s30, 128  }
 0x2d3   : > { %948 = vsyncadd (%p715_p0), %s542_s30, 4294967168  ;;  %p22_p2 = scmp.ge.s32.totalorder %s1066_s10, 4   ;;  %s1205_s24 = smov %s955_s25 }
 0x2d4   : > { %s1206_s25 = smov %s959_s26  ;;  %s1207_s26 = smov %s1078_s11 }
 0x2d5   : > { %s1208_s27 = smov %s1066_s10  ;;  %24 = sbr.rel (!%p22_p2) target bundleno = 9 (0x9), region = 105 }
 0x2da   :  { %548 = vsyncpa [#allocation3], 1 }
 0x2db   :  { %550 = vsyncpa [#allocation3 + $0x1], 1 }
 0x2dc   :  { %551 = vsyncpa [#allocation6], 1 }
 0x2dd   :  { %552 = vsyncpa [#allocation9], 1 }
 0x2de   :  { %553 = vsyncpa [#allocation4], 1 }
 0x2df   :  { %555 = vsyncpa [#allocation4 + $0x1], 1 }

</bundles_post_ra>
